<compile_context>
chip_gen: v5e
topology: v5e:2x2
jax: 0.10.0
libtpu: 0.0.40
codegen_flags: <defaults>
</compile_context>

<pallas_src>
import math

import jax
import jax.numpy as jnp
from jax.experimental import pallas as pl
from jax.experimental.pallas import tpu as pltpu


def _fcuup_kernel(x_ref, wt_ref, shift_ref, o_ref):
    # x_ref:     (TILE_M, C_in)   flattened tokens (batch-major; cls rows included)
    # wt_ref:    (C_out, C_in)    BN-folded 1x1-conv weight, channels-out major
    # shift_ref: (C_out, 1)       folded bias/BN shift (per output channel)
    # o_ref:     (C_out, TILE_M)  transposed output -> token axis on the 128 lanes
    #
    # (C_out, C_in) x (TILE_M, C_in) contracting both C_in minors == (x @ w')^T,
    # i.e. the q@k.T MXU pattern; result is produced channels-first directly.
    yt = jax.lax.dot_general(
        wt_ref[...], x_ref[...],
        dimension_numbers=(((1,), (1,)), ((), ())),
        preferred_element_type=jnp.float32,
    )                                                 # (C_out, TILE_M), f32 accum
    yt = yt + shift_ref[...]                          # per-channel shift (lane-broadcast)
    o_ref[...] = jnp.maximum(yt, 0.0).astype(o_ref.dtype)   # fused ReLU


def fcuup_forward(x, H, W, params, *, compute_dtype=jnp.float32, tile_m=512):
    """x: [B, N, C_in] with N = 1 + H_r*W_r (cls token first). Returns NCHW [B, C_out, H, W].

    For v6e/v7x, pass compute_dtype=jnp.bfloat16 to halve HBM/VMEM traffic and use
    the full-rate bf16 MXU path (accumulation stays f32); loosen tolerances then.
    """
    B, N, C_in = x.shape
    H_r = W_r = int(math.sqrt(N - 1))

    w = params["conv_w"]            # (C_in, C_out)  (PyTorch (C_out,C_in,1,1) pre-transposed)
    b = params["conv_b"]            # (C_out,)
    gamma, beta = params["bn_gamma"], params["bn_beta"]
    mean, var, eps = params["bn_mean"], params["bn_var"], params["bn_eps"]
    C_out = w.shape[1]

    # Fold conv bias + eval-mode BN into the weight and a single shift vector.
    # This is a one-time (C_in x C_out) op in the wrapper, not a per-element
    # pre-scale of the activations.
    scale = gamma / jnp.sqrt(var + eps)                          # (C_out,)
    w_t = (w * scale[None, :]).T.astype(compute_dtype)           # (C_out, C_in)
    shift = (b * scale + beta - mean * scale).reshape(C_out, 1).astype(jnp.float32)

    # Flatten (B, N) -> M WITHOUT slicing off the cls token (reshape is free; an
    # x[:, 1:, :] slice here would force a full HBM copy of the input).  The cls
    # rows are computed (B extra matmul rows) and dropped from the small output.
    x_flat = x.reshape(B * N, C_in).astype(compute_dtype)
    M_total = B * N

    # Tile the flattened token axis.  Real shapes use 512-row tiles (multiple of
    # 128 -> unmasked lane-dense stores; double-buffered tiles stay well inside
    # even v7x's 64 MiB VMEM); tiny inputs just take the whole thing in one step.
    tm = M_total if M_total <= tile_m else tile_m

    y_t = pl.pallas_call(
        _fcuup_kernel,
        out_shape=jax.ShapeDtypeStruct((C_out, M_total), jnp.float32),
        grid_spec=pltpu.PrefetchScalarGridSpec(
            num_scalar_prefetch=0,
            grid=(pl.cdiv(M_total, tm),),
            in_specs=[
                pl.BlockSpec((tm, C_in), lambda m: (m, 0)),
                # Constant index maps: weight / shift are fetched once and stay
                # resident in VMEM across all (parallel) M tiles.
                pl.BlockSpec((C_out, C_in), lambda m: (0, 0)),
                pl.BlockSpec((C_out, 1), lambda m: (0, 0)),
            ],
            out_specs=pl.BlockSpec((C_out, tm), lambda m: (0, m)),
        ),
        compiler_params=pltpu.CompilerParams(
            dimension_semantics=("parallel",)),   # independent M tiles -> megacore split
    )(x_flat, w_t, shift)                                        # (C_out, B*N)

    # Glue on the *small* channels-first activation map: drop cls tokens, reshape
    # to (B, C_out, H_r, W_r) (already channels-first -> no NCHW transpose of the
    # upsampled tensor), then nearest-neighbour upsample.
    y = y_t.reshape(C_out, B, N)[:, :, 1:]                       # (C_out, B, L)
    y = jnp.transpose(y.reshape(C_out, B, H_r, W_r), (1, 0, 2, 3))   # (B, C_out, H_r, W_r)

    if H % H_r == 0 and W % W_r == 0:
        # Integer up_stride: nearest == repeat each pixel; one broadcast+reshape.
        sh, sw = H // H_r, W // W_r
        y = jnp.broadcast_to(y[:, :, :, None, :, None],
                             (B, C_out, H_r, sh, W_r, sw)).reshape(B, C_out, H, W)
    else:
        ridx = (jnp.arange(H) * H_r) // H                        # PyTorch 'nearest': floor(dst*in/out)
        cidx = (jnp.arange(W) * W_r) // W
        y = y[:, :, ridx][:, :, :, cidx]
    return y


def _reference_forward(x, H, W, params):
    """Pure-JAX reference matching the PyTorch forward (eval-mode BN)."""
    B, N, C_in = x.shape
    H_r = W_r = int(math.sqrt(N - 1))
    w, b = params["conv_w"], params["conv_b"]
    gamma, beta = params["bn_gamma"], params["bn_beta"]
    mean, var, eps = params["bn_mean"], params["bn_var"], params["bn_eps"]
    x_r = x[:, 1:, :] @ w + b                                    # (B, L, C_out)
    x_r = (x_r - mean) / jnp.sqrt(var + eps) * gamma + beta
    x_r = jnp.maximum(x_r, 0.0)
    C_out = w.shape[1]
    x_r = x_r.reshape(B, H_r, W_r, C_out)
    ridx = (jnp.arange(H) * H_r) // H
    cidx = (jnp.arange(W) * W_r) // W
    x_r = x_r[:, ridx][:, :, cidx]
    return jnp.transpose(x_r, (0, 3, 1, 2))


if __name__ == "__main__":
    # Small shapes: inplanes=32, outplanes=16, patch grid 4x4 (N = 17), up_stride=2.
    inplanes, outplanes = 32, 16
    H_r = W_r = 4
    up_stride = 2
    B, N = 2, 1 + H_r * W_r
    H = W = H_r * up_stride

    key = jax.random.PRNGKey(0)
    kx, kw, kb, kg, kbe, km, kv = jax.random.split(key, 7)

    x = jax.random.normal(kx, (B, N, inplanes), dtype=jnp.float32)

    # conv_project: nn.Conv2d(inplanes, outplanes, 1) -> weight (Cout, Cin, 1, 1).
    # Stored pre-transposed as (Cin, Cout) for the token matmul.
    conv_w = (jax.random.normal(kw, (outplanes, inplanes), dtype=jnp.float32) * 0.1).T
    conv_b = jax.random.normal(kb, (outplanes,), dtype=jnp.float32) * 0.1

    params = {
        "conv_w": conv_w,
        "conv_b": conv_b,
        "bn_gamma": 1.0 + 0.1 * jax.random.normal(kg, (outplanes,), dtype=jnp.float32),
        "bn_beta": 0.1 * jax.random.normal(kbe, (outplanes,), dtype=jnp.float32),
        "bn_mean": 0.1 * jax.random.normal(km, (outplanes,), dtype=jnp.float32),
        "bn_var": jnp.abs(1.0 + 0.1 * jax.random.normal(kv, (outplanes,), dtype=jnp.float32)),
        "bn_eps": 1e-6,
    }

    out = fcuup_forward(x, H, W, params)
    out = jax.block_until_ready(out)

    ref = _reference_forward(x, H, W, params)
    assert out.shape == (B, outplanes, H, W), out.shape
    assert jnp.allclose(out, ref, atol=1e-5, rtol=1e-5), "mismatch vs reference"

    print("KERNEL_OK")
</pallas_src>

<mosaic_0001>
module attributes {stable_mosaic.version = 11 : i64} {
  func.func @_fcuup_kernel(%arg0: i32, %arg1: memref<34x32xf32, #tpu.memory_space<vmem>>, %arg2: memref<16x32xf32, #tpu.memory_space<vmem>>, %arg3: memref<16x1xf32, #tpu.memory_space<vmem>>, %arg4: memref<16x34xf32, #tpu.memory_space<vmem>>) attributes {dimension_semantics = [#tpu.dimension_semantics<parallel>], iteration_bounds = array<i64: 1>, scalar_prefetch = 0 : i64, scratch_operands = 0 : i64, tpu.core_type = #tpu.core_type<tc>, window_params = [{transform_indices = @transform_0, window_bounds = array<i64: 34, 32>}, {pipeline_mode = #tpu.pipeline_mode<synchronous>, transform_indices = @transform_1, window_bounds = array<i64: 16, 32>}, {pipeline_mode = #tpu.pipeline_mode<synchronous>, transform_indices = @transform_2, window_bounds = array<i64: 16, 1>}, {transform_indices = @transform_3, window_bounds = array<i64: 16, 34>}]} {
    %c0 = arith.constant 0 : index
    %c0_0 = arith.constant 0 : index
    %0 = vector.load %arg2[%c0, %c0_0] : memref<16x32xf32, #tpu.memory_space<vmem>>, vector<16x32xf32>
    %c0_1 = arith.constant 0 : index
    %c0_2 = arith.constant 0 : index
    %1 = vector.load %arg1[%c0_1, %c0_2] : memref<34x32xf32, #tpu.memory_space<vmem>>, vector<34x32xf32>
    %cst = arith.constant dense<0.000000e+00> : vector<16x34xf32>
    %2 = tpu.matmul %0, %1, %cst {dimension_numbers = #tpu.dot_dimension_numbers<[1], [1], [0], [0], [0, 0, 1, 0], [], []>} : vector<16x32xf32>, vector<34x32xf32>, vector<16x34xf32> -> vector<16x34xf32>
    %c0_3 = arith.constant 0 : index
    %c0_4 = arith.constant 0 : index
    %3 = vector.load %arg3[%c0_3, %c0_4] : memref<16x1xf32, #tpu.memory_space<vmem>>, vector<16x1xf32>
    %4 = vector.broadcast %3 : vector<16x1xf32> to vector<16x34xf32>
    %5 = arith.addf %2, %4 : vector<16x34xf32>
    %cst_5 = arith.constant 0.000000e+00 : f32
    %6 = vector.broadcast %cst_5 : f32 to vector<16x34xf32>
    %7 = arith.maximumf %5, %6 : vector<16x34xf32>
    %c0_6 = arith.constant 0 : index
    %c0_7 = arith.constant 0 : index
    %8 = vector.load %arg4[%c0_6, %c0_7] : memref<16x34xf32, #tpu.memory_space<vmem>>, vector<16x34xf32>
    tpu.vector_store %arg4[%c0_6, %c0_7], %7 {strides = array<i32>} : memref<16x34xf32, #tpu.memory_space<vmem>>, vector<16x34xf32>,
    return
  }
  func.func @transform_0(%arg0: i32) -> (i32, i32) {
    %c0_i32 = arith.constant 0 : i32
    %c0_i32_0 = arith.constant 0 : i32
    return %arg0, %c0_i32 : i32, i32
  }
  func.func @transform_1(%arg0: i32) -> (i32, i32) {
    %c0_i32 = arith.constant 0 : i32
    %c0_i32_0 = arith.constant 0 : i32
    %c0_i32_1 = arith.constant 0 : i32
    return %c0_i32, %c0_i32_0 : i32, i32
  }
  func.func @transform_2(%arg0: i32) -> (i32, i32) {
    %c0_i32 = arith.constant 0 : i32
    %c0_i32_0 = arith.constant 0 : i32
    %c0_i32_1 = arith.constant 0 : i32
    return %c0_i32, %c0_i32_0 : i32, i32
  }
  func.func @transform_3(%arg0: i32) -> (i32, i32) {
    %c0_i32 = arith.constant 0 : i32
    %c0_i32_0 = arith.constant 0 : i32
    return %c0_i32, %arg0 : i32, i32
  }
}

</mosaic_0001>

<bundles_post_ra>
// kernel: tpu_custom_call.1
= control target key start
LH: loop header
LB: loop body
LE: loop exit
PB: predicated region body
PF: predicated region fallthrough
CT: control target
= control target key end

     0   :  { %vm34_vm0 = vcmask 261120   ;;  %v145_v3 = vmov 0   ;;  %s211_s0 = inlined_call_operand.vmem [shape: f32[34,32], index: 0, kind: input, shape index: {}]   ;;  %s212_s1 = inlined_call_operand.vmem [shape: f32[16,32], index: 1, kind: input, shape index: {}]   ;;  %s213_s2 = inlined_call_operand.vmem [shape: f32[16,1], index: 2, kind: input, shape index: {}]   ;;  %s214_s3 = inlined_call_operand.hbm [shape: f32[16,34], index: 3, kind: output, shape index: {}]  }
   0x1   :  { %v21_v0 = vld [vmem:[%s211_s0 + $0x20] sm:$0x3]  ;;  %v20_v2 = vld [vmem:[%s211_s0 + $0x18] sm:$0xff]  ;;  %118 = vset.pattern.permute.xlu0 %v145_v3 }
   0x2   :  { %102 = vmatpush.xpose.msk.msra.mxu0 %vm34_vm0, %v21_v0  ;;  %109 = vmatpush.xpose.msk.msra.mxu1 %vm34_vm0, %v21_v0  ;;  %v22_v1 = vld [vmem:[%s213_s2] sm:$0xff] }
   0x3   :  { %26 = vperm.xlu0 %118, %v22_v1  }
   0x4   :  { %8 = vsyncpa [#allocation3], 0  ;;  %v19_v4 = vld [vmem:[%s211_s0 + $0x10] sm:$0xff]  ;;  %v23_v5 = vld [vmem:[%s213_s2 + $0x8] sm:$0xff]  ;;  %s90_s5 = sshll.u32 %s214_s3, 4  ;;  %vm81_vm1 = vcmask 277504   ;;  %s91_s5 = int_to_ptr.hbm [resolvable:$true] %s90_s5 }
   0x5   :  { %v18_v6 = vld [vmem:[%s211_s0 + $0x8] sm:$0xff]  ;;  %v17_v7 = vld [vmem:[%s211_s0] sm:$0xff]  ;;  %s146_s0 = smov [#allocation2]   ;;  %s148_s6 = smov 8  }
   0x6   :  { %103 = vmatpush.xpose.msk.msra.mxu0 %vm34_vm0, %v20_v2  ;;  %110 = vmatpush.xpose.msk.msra.mxu1 %vm34_vm0, %v20_v2  ;;  %v15_v8 = vld [vmem:[%s212_s1] sm:$0xff]  ;;  %v16_v9 = vld [vmem:[%s212_s1 + $0x8] sm:$0xff]  ;;  %s88_s29 = sshll.u32 %s146_s0, 4  ;;  %s147_s1 = smov 128   ;;  %s89_s29 = int_to_ptr.vmem [resolvable:$true] %s88_s29 }
   0xa   :  { %104 = vmatpush.xpose.msk.msra.mxu0 %vm34_vm0, %v19_v4  ;;  %111 = vmatpush.xpose.msk.msra.mxu1 %vm34_vm0, %v19_v4 }
   0xb   :  { %31 = vperm.xlu0 %118, %v23_v5  }
   0xe   :  { %105 = vmatpush.xpose.msk.msra.mxu0 %vm34_vm0, %v18_v6  ;;  %112 = vmatpush.xpose.msk.msra.mxu1 %vm34_vm0, %v18_v6 }
  0x12   :  { %106 = vmatpush.xpose.msk.msra.mxu0 %vm34_vm0, %v17_v7  ;;  %113 = vmatpush.xpose.msk.msra.mxu1 %vm34_vm0, %v17_v7 }
  0x15   :  { %107 = vmatmul.msk.f32.vlgmr.msra.gmra.mxu0 %vm34_vm0, %v15_v8  ;;  %108 = vmatmul.msk.f32.vlgmr.msra.gmra.mxu1 %vm34_vm0, %v16_v9 }
  0x75   :  { %v27_v10 = vpop.permute.xlu0 %26 }
  0x7d   :  { %v32_v11 = vpop.permute.xlu0 %31 }
  0x92   :  { %v73_v12 = vpop.f32.mrf.mxu0  ;;  %v76_v13 = vpop.f32.mrf.mxu1 }
  0x93   :  { %v74_v14 = vadd.f32 %v73_v12, %v27_v10  ;;  %v77_v15 = vadd.f32 %v76_v13, %v32_v11 }
  0x95   :  { %v79_v16 = vmax.f32 %v74_v14, 0.0  ;;  %v80_v17 = vmax.f32 %v77_v15, 0.0 }
  0x97   :  { %82 = vst.msk [vmem:[#allocation2] sm:$0xff] %vm81_vm1, %v79_v16 }
  0x98   :  { %83 = vst.msk [vmem:[#allocation2 + $0x8] sm:$0xff] %vm81_vm1, %v80_v17 }
  0x99   :  { %96 = dma.vmem_to_hbm [thread:$0]  %s89_s29, 256, %s91_s5, [#allocation3], %s147_s1, %s147_s1, %s148_s6  }
  0x9a   :  { %143 = dma.done.wait [#allocation3], 256  }
  0x9b   :  { %144 = vsyncadd [#allocation3], 4294967040 }
  0x9c   :  { %101 = vsyncpa [#allocation3], 1 }

</bundles_post_ra>
